<compile_context>
chip_gen: v6e
topology: v6e:2x2x1
jax: 0.10.0
libtpu: 0.0.40
codegen_flags: <defaults>
</compile_context>

<pallas_src>
import functools

import jax
import jax.numpy as jnp
from jax import lax
from jax.experimental import pallas as pl
from jax.experimental.pallas import tpu as pltpu


DROP_P = 0.1                                     # F.dropout(p=0.1), training=True
KEEP_SCALE = 1.0 / (1.0 - DROP_P)
DROP_THRESHOLD = int(round(DROP_P * (2 ** 32)))  # keep iff hash >= threshold
GOLDEN = 0x9E3779B9

# Lane-dense padded layout (set once at fold time; free at run time).
LI_PAD = 128                   # padded width of [lang | input]
HID_PAD = 128                  # padded width of hidden
OUT_PAD = 128                  # padded width of logits
CAT_PAD = LI_PAD + HID_PAD     # fused matmul K = 256
Z_PAD = OUT_PAD + HID_PAD      # fused matmul N = 256
NEG_BIG = -1e30                # "minus infinity" for padded logit columns


def rnn_seq_kernel(seed_ref,      # SMEM (1,) int32        [scalar prefetch]
                   x_li_ref,      # VMEM (1, B, LI_PAD)    per-step [lang|input]
                   hid0_ref,      # VMEM (B, HID_PAD)      initial hidden (resident)
                   w_ref,         # VMEM (CAT_PAD, Z_PAD)  fused weights (resident)
                   b_ref,         # VMEM (1, Z_PAD)        fused bias (resident)
                   out_ref,       # VMEM (1, B, OUT_PAD)   per-step log-probs
                   hid_out_ref,   # VMEM (B, HID_PAD)      final hidden (resident)
                   x_cat,         # VMEM scratch (B, CAT_PAD) carried [x_li | hidden]
                   *, n_out):
    t = pl.program_id(0)
    B = out_ref.shape[1]

    @pl.when(t == 0)
    def _init():
        x_cat[:, LI_PAD:] = hid0_ref[...]        # vreg-aligned (lane 128)

    # Per-step [lang|input] slab into the first LI_PAD lanes (vreg-aligned).
    x_cat[:, :LI_PAD] = x_li_ref[0]

    # ---- dropout random bits (VPU hash; LLO co-issues it with the MXU dot) ----
    rows = lax.broadcasted_iota(jnp.uint32, (B, OUT_PAD), 0)
    cols = lax.broadcasted_iota(jnp.uint32, (B, OUT_PAD), 1)
    smix = (seed_ref[0] + t).astype(jnp.uint32) * jnp.uint32(GOLDEN)
    h = (rows * jnp.uint32(OUT_PAD) + cols) ^ smix
    # lowbias32 finalizer -> well-mixed uniform u32 bits
    h = h ^ (h >> 16)
    h = h * jnp.uint32(0x7FEB352D)
    h = h ^ (h >> 15)
    h = h * jnp.uint32(0x846CA68B)
    h = h ^ (h >> 16)
    keep = h >= jnp.uint32(DROP_THRESHOLD)       # P(keep) = 1 - DROP_P

    # ---- single fused affine (input concat + i2o->o2o folded at fold time) ----
    #   z[:, :OUT_PAD]  = o2o(cat(i2o(x), i2h(x)))   (padded cols == 0)
    #   z[:, OUT_PAD:]  = i2h(x) = new hidden        (padded cols == 0)
    z = jnp.dot(x_cat[...], w_ref[...], preferred_element_type=jnp.float32) + b_ref[...]
    logits = z[:, :OUT_PAD]
    hid_new = z[:, OUT_PAD:]

    # dropout(p=0.1) then push padded logit columns to -inf-ish for log_softmax.
    pad_neg = jnp.where(cols < jnp.uint32(n_out), 0.0, NEG_BIG)
    out_drop = jnp.where(keep, logits * KEEP_SCALE, 0.0) + pad_neg

    # log_softmax along dim=1
    m = jnp.max(out_drop, axis=-1, keepdims=True)
    shifted = out_drop - m
    lse = jnp.log(jnp.sum(jnp.exp(shifted), axis=-1, keepdims=True))
    out_ref[0] = (shifted - lse).astype(out_ref.dtype)

    # Carry hidden to the next timestep (vreg-aligned store).
    x_cat[:, LI_PAD:] = hid_new

    @pl.when(t == pl.num_programs(0) - 1)
    def _finalize():
        hid_out_ref[...] = hid_new.astype(hid_out_ref.dtype)


def init_params(key, n_lang, n_inp, n_hid, n_out):
    """PyTorch nn.Linear default init: U(-1/sqrt(fan_in), 1/sqrt(fan_in))."""
    n_cat = n_lang + n_inp + n_hid
    n_oc = n_out + n_hid
    ks = jax.random.split(key, 6)

    def lin(kw, kb, fan_in, fan_out):
        bound = 1.0 / jnp.sqrt(fan_in)
        w = jax.random.uniform(kw, (fan_out, fan_in), jnp.float32, -bound, bound)
        b = jax.random.uniform(kb, (fan_out,), jnp.float32, -bound, bound)
        return w, b

    w_i2o, b_i2o = lin(ks[0], ks[1], n_cat, n_out)
    w_i2h, b_i2h = lin(ks[2], ks[3], n_cat, n_hid)
    w_o2o, b_o2o = lin(ks[4], ks[5], n_oc, n_out)
    return dict(w_i2o=w_i2o, b_i2o=b_i2o,
                w_i2h=w_i2h, b_i2h=b_i2h,
                w_o2o=w_o2o, b_o2o=b_o2o)


def fold_params(params, n_lang, n_inp, n_hid, n_out):
    """One-time prep: fold i2o->o2o into one affine, fold the input concat, and
    lay the result out lane-dense (128-padded) for the fused in-kernel matmul."""
    n_li = n_lang + n_inp
    assert n_li <= LI_PAD and n_hid <= HID_PAD and n_out <= OUT_PAD

    w_i2o_t = params["w_i2o"].T                   # (n_cat, n_out)
    w_i2h_t = params["w_i2h"].T                   # (n_cat, n_hid)
    # out_comb = cat((output, hidden)) -> first n_out o2o-input cols <-> output.
    A = params["w_o2o"][:, :n_out].T              # (n_out, n_out)
    Bm = params["w_o2o"][:, n_out:].T             # (n_hid, n_out)

    w_fold = w_i2o_t @ A + w_i2h_t @ Bm           # (n_cat, n_out): logits weights
    b_fold = params["b_i2o"] @ A + params["b_i2h"] @ Bm + params["b_o2o"]

    # Padded placement:
    #   rows [0:n_li]               <- [lang|input] rows
    #   rows [LI_PAD:LI_PAD+n_hid]  <- hidden rows
    #   cols [0:n_out]                 <- logits
    #   cols [OUT_PAD:OUT_PAD+n_hid]   <- new hidden
    w_pad = jnp.zeros((CAT_PAD, Z_PAD), jnp.float32)
    w_pad = w_pad.at[:n_li, :n_out].set(w_fold[:n_li])
    w_pad = w_pad.at[:n_li, OUT_PAD:OUT_PAD + n_hid].set(w_i2h_t[:n_li])
    w_pad = w_pad.at[LI_PAD:LI_PAD + n_hid, :n_out].set(w_fold[n_li:])
    w_pad = w_pad.at[LI_PAD:LI_PAD + n_hid, OUT_PAD:OUT_PAD + n_hid].set(w_i2h_t[n_li:])

    b_pad = jnp.zeros((1, Z_PAD), jnp.float32)
    b_pad = b_pad.at[0, :n_out].set(b_fold)
    b_pad = b_pad.at[0, OUT_PAD:OUT_PAD + n_hid].set(params["b_i2h"])

    # TODO(synk): for larger models on v6e/v7x, cast w_pad/b_pad (and activations)
    # to bf16 here while keeping preferred_element_type=f32 in the kernel.
    return dict(w=w_pad, b=b_pad)


@functools.partial(jax.jit, static_argnames=("n_out",))
def model_forward_seq(lang_seq, inp_seq, hidden0, w_pad, b_pad, seed, *, n_out):
    """Run T module-forward steps inside ONE pallas_call.

    lang_seq: (T, B, n_lang), inp_seq: (T, B, n_inp), hidden0: (B, n_hid).
    Returns (log_probs: (T, B, n_out), final_hidden: (B, n_hid)).
    """
    T, B = lang_seq.shape[:2]
    n_li = lang_seq.shape[-1] + inp_seq.shape[-1]
    n_hid = hidden0.shape[-1]

    x_li = jnp.concatenate([lang_seq, inp_seq], axis=-1)            # fold input cat
    x_pad = jnp.pad(x_li, ((0, 0), (0, 0), (0, LI_PAD - n_li)))
    hid0_pad = jnp.pad(hidden0, ((0, 0), (0, HID_PAD - n_hid)))

    kernel = functools.partial(rnn_seq_kernel, n_out=n_out)

    # TODO(synk): if lang/input are one-hot (char-rnn tutorial), pass indices via
    # scalar prefetch and gather weight rows instead of the dense x_li slab.
    grid_spec = pltpu.PrefetchScalarGridSpec(
        num_scalar_prefetch=1,
        grid=(T,),
        in_specs=[
            pl.BlockSpec((1, B, LI_PAD), lambda t, s: (t, 0, 0)),    # per-step input
            pl.BlockSpec((B, HID_PAD), lambda t, s: (0, 0)),         # hidden0 (resident)
            pl.BlockSpec((CAT_PAD, Z_PAD), lambda t, s: (0, 0)),     # weights (resident)
            pl.BlockSpec((1, Z_PAD), lambda t, s: (0, 0)),           # bias (resident)
        ],
        out_specs=(
            pl.BlockSpec((1, B, OUT_PAD), lambda t, s: (t, 0, 0)),   # per-step log-probs
            pl.BlockSpec((B, HID_PAD), lambda t, s: (0, 0)),         # final hidden
        ),
        scratch_shapes=[pltpu.VMEM((B, CAT_PAD), jnp.float32)],      # carried state
    )

    out_pad, hid_pad = pl.pallas_call(
        kernel,
        out_shape=(jax.ShapeDtypeStruct((T, B, OUT_PAD), jnp.float32),
                   jax.ShapeDtypeStruct((B, HID_PAD), jnp.float32)),
        grid_spec=grid_spec,
        # Time axis carries the hidden state -> sequential ("arbitrary").
        # TODO(synk): for many independent generation streams on v7x, add a leading
        # batch grid axis marked "parallel" so both TensorCores are used.
        compiler_params=pltpu.CompilerParams(dimension_semantics=("arbitrary",)),
    )(seed, x_pad, hid0_pad, w_pad, b_pad)

    return out_pad[:, :, :n_out], hid_pad[:, :n_hid]


def model_forward(lang, inp, hidden, w_pad, b_pad, seed, *, n_out):
    """Single-step forward matching the PyTorch module API (T == 1)."""
    out_seq, hid = model_forward_seq(lang[None], inp[None], hidden, w_pad, b_pad,
                                     seed, n_out=n_out)
    return out_seq[0], hid


if __name__ == "__main__":
    B, n_lang, n_inp, n_hid, n_out, T = 2, 4, 8, 32, 16, 8

    key = jax.random.PRNGKey(0)
    k_lang, k_inp, k_par = jax.random.split(key, 3)

    lang_seq = jax.random.normal(k_lang, (T, B, n_lang), jnp.float32)
    inp_seq = jax.random.normal(k_inp, (T, B, n_inp), jnp.float32)
    hidden0 = jnp.zeros((B, n_hid), jnp.float32)           # Model.init_hidden (batched)

    params = init_params(k_par, n_lang, n_inp, n_hid, n_out)
    folded = fold_params(params, n_lang, n_inp, n_hid, n_out)   # one-time prep
    seed = jnp.array([1234], dtype=jnp.int32)

    # Multi-step generation: the whole time loop runs inside one pallas_call.
    out_seq, hid_final = model_forward_seq(lang_seq, inp_seq, hidden0,
                                           folded["w"], folded["b"], seed, n_out=n_out)
    jax.block_until_ready((out_seq, hid_final))
    assert out_seq.shape == (T, B, n_out) and hid_final.shape == (B, n_hid)

    # Single-step API parity with Model.forward.
    out0, hid1 = model_forward(lang_seq[0], inp_seq[0], hidden0,
                               folded["w"], folded["b"], seed, n_out=n_out)
    jax.block_until_ready((out0, hid1))
    assert out0.shape == (B, n_out) and hid1.shape == (B, n_hid)

    # ---- pure-JAX reference of the torch module (replicates the on-chip mask) ----
    def lowbias32(h):
        h = h ^ (h >> 16)
        h = h * jnp.uint32(0x7FEB352D)
        h = h ^ (h >> 15)
        h = h * jnp.uint32(0x846CA68B)
        return h ^ (h >> 16)

    def keep_mask(t):
        rows = jnp.arange(B, dtype=jnp.uint32)[:, None]
        cols = jnp.arange(OUT_PAD, dtype=jnp.uint32)[None, :]
        smix = jnp.uint32(1234 + t) * jnp.uint32(GOLDEN)
        h = lowbias32((rows * jnp.uint32(OUT_PAD) + cols) ^ smix)
        return (h >= jnp.uint32(DROP_THRESHOLD))[:, :n_out]

    hid_ref = hidden0
    max_err = 0.0
    for t in range(T):
        in_comb = jnp.concatenate([lang_seq[t], inp_seq[t], hid_ref], axis=1)
        o = in_comb @ params["w_i2o"].T + params["b_i2o"]
        hid_ref = in_comb @ params["w_i2h"].T + params["b_i2h"]
        o = jnp.concatenate([o, hid_ref], axis=1) @ params["w_o2o"].T + params["b_o2o"]
        o = jnp.where(keep_mask(t), o * KEEP_SCALE, 0.0)
        o = jax.nn.log_softmax(o, axis=-1)
        max_err = max(max_err, float(jnp.max(jnp.abs(out_seq[t] - o))))

    assert max_err < 2e-2, f"per-step log-prob mismatch: {max_err}"
    assert jnp.allclose(hid_final, hid_ref, atol=2e-2, rtol=2e-2)
    # log_softmax rows must normalize to 1 regardless of the dropout mask
    assert jnp.allclose(jnp.exp(out_seq).sum(-1), 1.0, atol=1e-3)
    assert jnp.allclose(out0, out_seq[0], atol=2e-2, rtol=2e-2)

    print("KERNEL_OK")
</pallas_src>

<mosaic_0001>
module attributes {stable_mosaic.version = 11 : i64} {
  func.func @rnn_seq_kernel(%arg0: i32, %arg1: memref<1xi32, #tpu.memory_space<smem>>, %arg2: memref<1x2x128xf32, #tpu.memory_space<vmem>>, %arg3: memref<2x128xf32, #tpu.memory_space<vmem>>, %arg4: memref<256x256xf32, #tpu.memory_space<vmem>>, %arg5: memref<1x256xf32, #tpu.memory_space<vmem>>, %arg6: memref<1x2x128xf32, #tpu.memory_space<vmem>>, %arg7: memref<2x128xf32, #tpu.memory_space<vmem>>, %arg8: memref<2x256xf32, #tpu.memory_space<vmem>>) attributes {dimension_semantics = [#tpu.dimension_semantics<arbitrary>], iteration_bounds = array<i64: 8>, scalar_prefetch = 1 : i64, scratch_operands = 1 : i64, tpu.core_type = #tpu.core_type<tc>, window_params = [{transform_indices = @transform_0, window_bounds = array<i64: 1, 2, 128>}, {pipeline_mode = #tpu.pipeline_mode<synchronous>, transform_indices = @transform_1, window_bounds = array<i64: 2, 128>}, {pipeline_mode = #tpu.pipeline_mode<synchronous>, transform_indices = @transform_2, window_bounds = array<i64: 256, 256>}, {pipeline_mode = #tpu.pipeline_mode<synchronous>, transform_indices = @transform_3, window_bounds = array<i64: 1, 256>}, {transform_indices = @transform_4, window_bounds = array<i64: 1, 2, 128>}, {pipeline_mode = #tpu.pipeline_mode<synchronous>, transform_indices = @transform_5, window_bounds = array<i64: 2, 128>}]} {
    %c0_i32 = arith.constant 0 : i32
    %0 = arith.cmpi eq, %arg0, %c0_i32 : i32
    %1 = arith.extui %0 : i1 to i32
    %c0_i32_0 = arith.constant 0 : i32
    %2 = arith.cmpi ne, %1, %c0_i32_0 : i32
    scf.if %2 {
      %c0_25 = arith.constant 0 : index
      %c0_26 = arith.constant 0 : index
      %66 = vector.load %arg3[%c0_25, %c0_26] : memref<2x128xf32, #tpu.memory_space<vmem>>, vector<2x128xf32>
      %c0_27 = arith.constant 0 : index
      %c128_28 = arith.constant 128 : index
      %67 = vector.load %arg8[%c0_27, %c128_28] : memref<2x256xf32, #tpu.memory_space<vmem>>, vector<2x128xf32>
      tpu.vector_store %arg8[%c0_27, %c128_28], %66 {strides = array<i32>} : memref<2x256xf32, #tpu.memory_space<vmem>>, vector<2x128xf32>,
    } else {
    }
    %c0 = arith.constant 0 : index
    %c0_1 = arith.constant 0 : index
    %c0_2 = arith.constant 0 : index
    %3 = vector.load %arg2[%c0, %c0_1, %c0_2] : memref<1x2x128xf32, #tpu.memory_space<vmem>>, vector<1x2x128xf32>
    %4 = vector.shape_cast %3 : vector<1x2x128xf32> to vector<2x128xf32>
    %c0_3 = arith.constant 0 : index
    %c0_4 = arith.constant 0 : index
    %5 = vector.load %arg8[%c0_3, %c0_4] : memref<2x256xf32, #tpu.memory_space<vmem>>, vector<2x128xf32>
    tpu.vector_store %arg8[%c0_3, %c0_4], %4 {strides = array<i32>} : memref<2x256xf32, #tpu.memory_space<vmem>>, vector<2x128xf32>,
    %6 = tpu.iota {dimensions = array<i32: 0>} : vector<2x128xi32>
    %7 = tpu.iota {dimensions = array<i32: 1>} : vector<2x128xi32>
    %c0_5 = arith.constant 0 : index
    %8 = memref.load %arg1[%c0_5] : memref<1xi32, #tpu.memory_space<smem>>
    %9 = arith.addi %8, %arg0 : i32
    %c-1640531527_i32 = arith.constant -1640531527 : i32
    %10 = arith.muli %9, %c-1640531527_i32 : i32
    %c128_i32 = arith.constant 128 : i32
    %11 = vector.broadcast %c128_i32 : i32 to vector<2x128xi32>
    %12 = arith.muli %6, %11 : vector<2x128xi32>
    %13 = arith.addi %12, %7 : vector<2x128xi32>
    %14 = vector.broadcast %10 : i32 to vector<2x128xi32>
    %15 = arith.xori %13, %14 : vector<2x128xi32>
    %c16_i32 = arith.constant 16 : i32
    %16 = vector.broadcast %c16_i32 : i32 to vector<2x128xi32>
    %17 = arith.shrui %15, %16 : vector<2x128xi32>
    %18 = arith.xori %15, %17 : vector<2x128xi32>
    %c2146121005_i32 = arith.constant 2146121005 : i32
    %19 = vector.broadcast %c2146121005_i32 : i32 to vector<2x128xi32>
    %20 = arith.muli %18, %19 : vector<2x128xi32>
    %c15_i32 = arith.constant 15 : i32
    %21 = vector.broadcast %c15_i32 : i32 to vector<2x128xi32>
    %22 = arith.shrui %20, %21 : vector<2x128xi32>
    %23 = arith.xori %20, %22 : vector<2x128xi32>
    %c-2073254261_i32 = arith.constant -2073254261 : i32
    %24 = vector.broadcast %c-2073254261_i32 : i32 to vector<2x128xi32>
    %25 = arith.muli %23, %24 : vector<2x128xi32>
    %c16_i32_6 = arith.constant 16 : i32
    %26 = vector.broadcast %c16_i32_6 : i32 to vector<2x128xi32>
    %27 = arith.shrui %25, %26 : vector<2x128xi32>
    %28 = arith.xori %25, %27 : vector<2x128xi32>
    %c429496730_i32 = arith.constant 429496730 : i32
    %29 = vector.broadcast %c429496730_i32 : i32 to vector<2x128xi32>
    %30 = arith.cmpi uge, %28, %29 : vector<2x128xi32>
    %c0_7 = arith.constant 0 : index
    %c0_8 = arith.constant 0 : index
    %31 = vector.load %arg8[%c0_7, %c0_8] : memref<2x256xf32, #tpu.memory_space<vmem>>, vector<2x256xf32>
    %c0_9 = arith.constant 0 : index
    %c0_10 = arith.constant 0 : index
    %32 = vector.load %arg4[%c0_9, %c0_10] : memref<256x256xf32, #tpu.memory_space<vmem>>, vector<256x256xf32>
    %cst = arith.constant dense<0.000000e+00> : vector<2x256xf32>
    %33 = tpu.matmul %31, %32, %cst {dimension_numbers = #tpu.dot_dimension_numbers<[1], [0], [0], [1], [0, 0, 1, 1], [], []>} : vector<2x256xf32>, vector<256x256xf32>, vector<2x256xf32> -> vector<2x256xf32>
    %c0_11 = arith.constant 0 : index
    %c0_12 = arith.constant 0 : index
    %34 = vector.load %arg5[%c0_11, %c0_12] : memref<1x256xf32, #tpu.memory_space<vmem>>, vector<1x256xf32>
    %35 = vector.broadcast %34 : vector<1x256xf32> to vector<2x256xf32>
    %36 = arith.addf %33, %35 : vector<2x256xf32>
    %37 = vector.extract_strided_slice %36 {offsets = [0, 0], sizes = [2, 128], strides = [1, 1]} : vector<2x256xf32> to vector<2x128xf32>
    %38 = vector.extract_strided_slice %36 {offsets = [0, 128], sizes = [2, 128], strides = [1, 1]} : vector<2x256xf32> to vector<2x128xf32>
    %c16_i32_13 = arith.constant 16 : i32
    %39 = vector.broadcast %c16_i32_13 : i32 to vector<2x128xi32>
    %40 = arith.cmpi ult, %7, %39 : vector<2x128xi32>
    %cst_14 = arith.constant 0.000000e+00 : f32
    %cst_15 = arith.constant -1.000000e+30 : f32
    %41 = vector.broadcast %cst_14 : f32 to vector<2x128xf32>
    %42 = vector.broadcast %cst_15 : f32 to vector<2x128xf32>
    %43 = arith.select %40, %41, %42 : vector<2x128xi1>, vector<2x128xf32>
    %cst_16 = arith.constant 1.11111116 : f32
    %44 = vector.broadcast %cst_16 : f32 to vector<2x128xf32>
    %45 = arith.mulf %37, %44 : vector<2x128xf32>
    %cst_17 = arith.constant 0.000000e+00 : f32
    %46 = vector.broadcast %cst_17 : f32 to vector<2x128xf32>
    %47 = arith.select %30, %45, %46 : vector<2x128xi1>, vector<2x128xf32>
    %48 = arith.addf %47, %43 : vector<2x128xf32>
    %cst_18 = arith.constant dense<0xFF800000> : vector<2xf32>
    %49 = vector.multi_reduction <maximumf>, %48, %cst_18 [1] : vector<2x128xf32> to vector<2xf32>
    %50 = vector.shape_cast %49 : vector<2xf32> to vector<2x1xf32>
    %51 = vector.broadcast %50 : vector<2x1xf32> to vector<2x128xf32>
    %52 = arith.subf %48, %51 : vector<2x128xf32>
    %53 = math.exp %52 : vector<2x128xf32>
    %cst_19 = arith.constant dense<0.000000e+00> : vector<2xf32>
    %54 = vector.multi_reduction <add>, %53, %cst_19 [1] : vector<2x128xf32> to vector<2xf32>
    %55 = vector.shape_cast %54 : vector<2xf32> to vector<2x1xf32>
    %56 = math.log %55 : vector<2x1xf32>
    %57 = vector.broadcast %56 : vector<2x1xf32> to vector<2x128xf32>
    %58 = arith.subf %52, %57 : vector<2x128xf32>
    %c0_20 = arith.constant 0 : index
    %c0_21 = arith.constant 0 : index
    %c0_22 = arith.constant 0 : index
    %59 = vector.load %arg6[%c0_20, %c0_21, %c0_22] : memref<1x2x128xf32, #tpu.memory_space<vmem>>, vector<1x2x128xf32>
    %60 = vector.shape_cast %59 : vector<1x2x128xf32> to vector<2x128xf32>
    %61 = vector.shape_cast %58 : vector<2x128xf32> to vector<1x2x128xf32>
    tpu.vector_store %arg6[%c0_20, %c0_21, %c0_22], %61 {strides = array<i32>} : memref<1x2x128xf32, #tpu.memory_space<vmem>>, vector<1x2x128xf32>,
    %c0_23 = arith.constant 0 : index
    %c128 = arith.constant 128 : index
    %62 = vector.load %arg8[%c0_23, %c128] : memref<2x256xf32, #tpu.memory_space<vmem>>, vector<2x128xf32>
    tpu.vector_store %arg8[%c0_23, %c128], %38 {strides = array<i32>} : memref<2x256xf32, #tpu.memory_space<vmem>>, vector<2x128xf32>,
    %c7_i32 = arith.constant 7 : i32
    %63 = arith.cmpi eq, %arg0, %c7_i32 : i32
    %64 = arith.extui %63 : i1 to i32
    %c0_i32_24 = arith.constant 0 : i32
    %65 = arith.cmpi ne, %64, %c0_i32_24 : i32
    scf.if %65 {
      %c0_25 = arith.constant 0 : index
      %c0_26 = arith.constant 0 : index
      %66 = vector.load %arg7[%c0_25, %c0_26] : memref<2x128xf32, #tpu.memory_space<vmem>>, vector<2x128xf32>
      tpu.vector_store %arg7[%c0_25, %c0_26], %38 {strides = array<i32>} : memref<2x128xf32, #tpu.memory_space<vmem>>, vector<2x128xf32>,
    } else {
    }
    return
  }
  func.func @transform_0(%arg0: i32, %arg1: memref<1xi32, #tpu.memory_space<smem>>) -> (i32, i32, i32) {
    %c0_i32 = arith.constant 0 : i32
    %c0_i32_0 = arith.constant 0 : i32
    %c0_i32_1 = arith.constant 0 : i32
    return %arg0, %c0_i32, %c0_i32_0 : i32, i32, i32
  }
  func.func @transform_1(%arg0: i32, %arg1: memref<1xi32, #tpu.memory_space<smem>>) -> (i32, i32) {
    %c0_i32 = arith.constant 0 : i32
    %c0_i32_0 = arith.constant 0 : i32
    %c0_i32_1 = arith.constant 0 : i32
    return %c0_i32, %c0_i32_0 : i32, i32
  }
  func.func @transform_2(%arg0: i32, %arg1: memref<1xi32, #tpu.memory_space<smem>>) -> (i32, i32) {
    %c0_i32 = arith.constant 0 : i32
    %c0_i32_0 = arith.constant 0 : i32
    %c0_i32_1 = arith.constant 0 : i32
    return %c0_i32, %c0_i32_0 : i32, i32
  }
  func.func @transform_3(%arg0: i32, %arg1: memref<1xi32, #tpu.memory_space<smem>>) -> (i32, i32) {
    %c0_i32 = arith.constant 0 : i32
    %c0_i32_0 = arith.constant 0 : i32
    %c0_i32_1 = arith.constant 0 : i32
    return %c0_i32, %c0_i32_0 : i32, i32
  }
  func.func @transform_4(%arg0: i32, %arg1: memref<1xi32, #tpu.memory_space<smem>>) -> (i32, i32, i32) {
    %c0_i32 = arith.constant 0 : i32
    %c0_i32_0 = arith.constant 0 : i32
    %c0_i32_1 = arith.constant 0 : i32
    return %arg0, %c0_i32, %c0_i32_0 : i32, i32, i32
  }
  func.func @transform_5(%arg0: i32, %arg1: memref<1xi32, #tpu.memory_space<smem>>) -> (i32, i32) {
    %c0_i32 = arith.constant 0 : i32
    %c0_i32_0 = arith.constant 0 : i32
    %c0_i32_1 = arith.constant 0 : i32
    return %c0_i32, %c0_i32_0 : i32, i32
  }
}

</mosaic_0001>

<bundles_post_ra>
// kernel: model_forward_seq.1
= control target key start
LH: loop header
LB: loop body
LE: loop exit
PB: predicated region body
PF: predicated region fallthrough
CT: control target
= control target key end

     0   :  { %s948_s0 = inlined_call_operand.<no memory space> [shape: s32[1], index: 0, kind: input, shape index: {}]   ;;  %s949_s1 = inlined_call_operand.vmem [shape: f32[8,2,128], index: 1, kind: input, shape index: {}]   ;;  %s950_s2 = inlined_call_operand.vmem [shape: f32[2,128], index: 2, kind: input, shape index: {}]   ;;  %s951_s3 = inlined_call_operand.hbm [shape: f32[256,256], index: 3, kind: input, shape index: {}]   ;;  %s952_s4 = inlined_call_operand.vmem [shape: f32[1,256], index: 4, kind: input, shape index: {}]   ;;  %s953_s5 = inlined_call_operand.hbm [shape: f32[8,2,128], index: 5, kind: output, shape index: {0}]   ;;  %s954_s6 = inlined_call_operand.hbm [shape: f32[2,128], index: 6, kind: output, shape index: {1}]  }
   0x1   :  { %12 = sst [smem:[#allocation4]] %s948_s0 }
   0x2   :  { %13 = vsyncpa [#allocation6], 0 }
   0x3   :  { %14 = vsyncpa [#allocation7], 0 }
   0x4   :  { %16 = vsyncpa [#allocation7 + $0x1], 0 }
   0x5   :  { %17 = vsyncpa [#allocation10], 0  ;;  %s800_s23 = smov 0   ;;  %s802_s24 = smov 0  }
   0x6   :  { %s804_s25 = smov 0   ;;  %s806_s26 = smov 0  }
   0x7 LB: > { %s821_s0 = sadd.s32 4294967295, %s754_s26   ;;  %s555_s27 = sadd.s32 4294967294, %s754_s26   ;;  %s754_s26 = sphi %s806_s26, %s968_s26   ;;  %s750_s25 = sphi %s804_s25, %s967_s25   ;;  %s746_s24 = sphi %s802_s24, %s966_s24   ;;  %s742_s23 = sphi %s800_s23, %s965_s23  }
   0x8   : > { %s825_s28 = sadd.s32 1, %s754_s26   ;;  %s119_s29 = sadd.s32 1, %s750_s25 }
   0x9   : > { %s116_s30 = ssub.s32 %s754_s26, %s825_s28  ;;  %p129_p0 = scmp.ne.s32.totalorder %s750_s25, %s746_s24 }
   0xa   : > { %p117_p1 = scmp.eq.s32.totalorder %s116_s30, 0  ;;  %p955_p2 = scmp.eq.s32.totalorder %s821_s0, 7 }
   0xb   : > { %p135_p3 = scmp.ne.s32.totalorder %s746_s24, %s742_s23  ;;  %p136_p4 = scmp.eq.s32.totalorder %s555_s27, 7 }
   0xc   : > { %s836_s7 = scalar_select %p117_p1, %s750_s25, %s119_s29  }
   0xd   : > { %p840_p5 = por %p955_p2, %p129_p0  ;;  %p844_p6 = por %p136_p4, %p135_p3 }
   0xe   : > { %p556_p7 = scmp.ge.s32.totalorder %s754_s26, 1  ;;  %p164_p8 = scmp.lt.s32.totalorder %s754_s26, 9 }
   0xf   : > { %s957_s9 = scalar_select %p844_p6, 1, 0 }
  0x10   : > { %p590_p10 = scmp.eq.s32.totalorder %s821_s0, 0  ;;  %p852_p11 = pnand %p556_p7, %p164_p8 }
  0x11   : > { %s756_s11 = smov [#allocation5]  }
  0x12   : > { %s179_s12 = sshll.u32 %s756_s11, 4  ;;  %p582_p12 = pneg %p852_p11  ;;  %s180_s12 = int_to_ptr.vmem [resolvable:$true] %s179_s12 }
  0x13   : > { %s647_s13 = scalar_lea.vmem %s180_s12, 8192  ;;  %p655_p2 = scmp.lt.s32.totalorder %s180_s12, %s180_s12 }
  0x14   : > { %p583_p13 = pnand %p590_p10, %p582_p12  ;;  %p648_p1 = scmp.ne.s32.totalorder %s180_s12, %s647_s13 }
  0x15   : > { %p656_p9 = scmp.lt.s32.totalorder %s647_s13, %s647_s13 }
  0x16   : > { %p638_p0 = pneg %p583_p13 }
  0x17   : > { %p657_p6 = por %p656_p9, %p655_p2 }
  0x18   : > { %p650_p3 = pnand %p648_p1, %p638_p0 }
  0x1a   : > { %p651_p4 = pneg %p650_p3 }
  0x1c   : > { %p658_p7 = pnand %p657_p6, %p651_p4 }
  0x1e   : > { %661 = shalt.err (!%p658_p7)
}
  0x1f   : > { %s757_s14 = smov 256   ;;  %s758_s15 = smov 16  }
  0x20   : > { %585 = dma.hbm_to_vmem [thread:$0]  (!%p583_p13), %s951_s3, 8192, %s180_s12, [#allocation6], %s757_s14, %s757_s14, %s758_s15  }
  0x21   : > { %205 = sbr.rel (%p852_p11) target bundleno = 673 (0x2a1), region = 36 }
  0x26   : > { %729 = dma.done.wait (%p590_p10), [#allocation6], 8192  }
  0x27   : > { %731 = vsyncadd (%p590_p10), [#allocation6], 4294959104  ;;  %s227_s18 = sand.u32 1, %s746_s24   ;;  %p232_p2 = scmp.lt.s32.totalorder %s821_s0, 7 }
  0x28   : > { %s873_s19 = sshll.u32 %s227_s18, 1  ;;  %p959_p6 = scmp.ne.s32.totalorder %s821_s0, 0 }
  0x29   : > { %s233_s20 = scalar_select %p232_p2, %s821_s0, 7 }
  0x2a   : > { %s229_s30 = scalar_lea.vmem [#allocation8], %s873_s19  ;;  %239 = sbr.rel (%p959_p6) target bundleno = 49 (0x31), region = 44 }
  0x2b   : > { %s562_s21 = sshll.u32 %s233_s20, 1 }
  0x2c   : > { %s879_s29 = scalar_lea.vmem %s949_s1, %s562_s21 }
  0x2f   : > { %v240_v0 = vld [vmem:[%s950_s2] sm:$0x3] }
  0x30   : > { %241 = vst [vmem:[#allocation2 + $0x2] sm:$0x3] %v240_v0 }
  0x31 PF: > { %v296_v1 = vld [vmem:[#allocation5 + $0xf8] sm:$0xff]  ;;  %v295_v2 = vld [vmem:[#allocation5 + $0xf0] sm:$0xff]  ;;  %v294_v3 = vld [vmem:[#allocation5 + $0xe8] sm:$0xff]  ;;  %s248_s12 = sld [smem:[#allocation4]]  ;;  %vm428_vm2 = vcmask 1041408   ;;  %p565_p8 = scmp.ne.s32.totalorder %s821_s0, 7 }
  0x32   : > { %352 = vmatprep.subr.mxu0 %v296_v1  ;;  %v293_v4 = vld [vmem:[#allocation5 + $0xe0] sm:$0xff]  ;;  %v292_v5 = vld [vmem:[#allocation5 + $0xd8] sm:$0xff]  ;;  %v291_v6 = vld [vmem:[#allocation5 + $0xd0] sm:$0xff] }
  0x33   : > { %353 = vmatpush1.msra.mxu0 %v295_v2  ;;  %v290_v7 = vld [vmem:[#allocation5 + $0xc8] sm:$0xff]  ;;  %v289_v8 = vld [vmem:[#allocation5 + $0xc0] sm:$0xff]  ;;  %v288_v9 = vld [vmem:[#allocation5 + $0xb8] sm:$0xff] }
  0x34   : > { %354 = vmatprep.subr.mxu0 %v294_v3  ;;  %v287_v10 = vld [vmem:[#allocation5 + $0xb0] sm:$0xff]  ;;  %v286_v11 = vld [vmem:[#allocation5 + $0xa8] sm:$0xff]  ;;  %v285_v12 = vld [vmem:[#allocation5 + $0xa0] sm:$0xff] }
  0x35   : > { %355 = vmatpush1.msra.mxu0 %v293_v4  ;;  %v284_v13 = vld [vmem:[#allocation5 + $0x98] sm:$0xff]  ;;  %v283_v14 = vld [vmem:[#allocation5 + $0x90] sm:$0xff]  ;;  %v282_v15 = vld [vmem:[#allocation5 + $0x88] sm:$0xff]  ;;  %v244_v4 = vlaneseq }
  0x36   : > { %356 = vmatprep.subr.mxu0 %v292_v5  ;;  %v281_v16 = vld [vmem:[#allocation5 + $0x80] sm:$0xff]  ;;  %v280_v17 = vld [vmem:[#allocation5 + $0x78] sm:$0xff]  ;;  %v279_v18 = vld [vmem:[#allocation5 + $0x70] sm:$0xff] }
  0x37   : > { %357 = vmatpush1.msra.mxu0 %v291_v6  ;;  %v278_v19 = vld [vmem:[#allocation5 + $0x68] sm:$0xff]  ;;  %v277_v20 = vld [vmem:[#allocation5 + $0x60] sm:$0xff]  ;;  %v276_v21 = vld [vmem:[#allocation5 + $0x58] sm:$0xff]  ;;  %v245_v5 = vshrl.u32 %v244_v4, 7  ;;  %s249_s13 = sadd.s32 %s821_s0, %s248_s12  ;;  %v247_v6 = vand.u32 127, %v244_v4 }
  0x38   : > { %358 = vmatprep.subr.mxu0 %v290_v7  ;;  %v275_v22 = vld [vmem:[#allocation5 + $0x50] sm:$0xff]  ;;  %v274_v23 = vld [vmem:[#allocation5 + $0x48] sm:$0xff]  ;;  %v273_v24 = vld [vmem:[#allocation5 + $0x40] sm:$0xff]  ;;  %s250_s14 = smul.u32 2654435769, %s249_s13 }
  0x39   : > { %359 = vmatpush1.msra.mxu0 %v289_v8  ;;  %v242_v25 = vld [vmem:[%s879_s29] sm:$0x3]  ;;  %v271_v27 = vld [vmem:[#allocation5 + $0x30] sm:$0xff]  ;;  %v270_v28 = vld [vmem:[#allocation5 + $0x28] sm:$0xff]  ;;  %v251_v7 = vmul.u32 128, %v245_v5  ;;  %vm423_vm0 = vcmp.lt.u32.totalorder %v247_v6, 16 }
  0x3a   : > { %360 = vmatprep.subr.mxu0 %v288_v9  ;;  %v272_v26 = vld [vmem:[#allocation5 + $0x38] sm:$0xff]  ;;  %243 = vst [vmem:[#allocation2] sm:$0x3] %v242_v25  ;;  %v269_v29 = vld [vmem:[#allocation5 + $0x20] sm:$0xff]  ;;  %v267_v31 = vld [vmem:[#allocation5 + $0x10] sm:$0xff]  ;;  %v253_v9 = vstv %s250_s14 }
  0x3b   : > { %361 = vmatpush1.msra.mxu0 %v287_v10  ;;  %v268_v30 = vld [vmem:[#allocation5 + $0x18] sm:$0xff]  ;;  %v266_v32 = vld [vmem:[#allocation5 + $0x8] sm:$0xff]  ;;  %v265_v33 = vld [vmem:[#allocation5] sm:$0xff]  ;;  %v252_v8 = vadd.s32 %v251_v7, %v247_v6 }
  0x3c   : > { %362 = vmatprep.subr.mxu0 %v286_v11  ;;  %v328_v35 = vld [vmem:[#allocation5 + $0x1f8] sm:$0xff]  ;;  %v327_v37 = vld [vmem:[#allocation5 + $0x1f0] sm:$0xff]  ;;  %v326_v38 = vld [vmem:[#allocation5 + $0x1e8] sm:$0xff] }
  0x3d   : > { %363 = vmatpush1.msra.mxu0 %v285_v12  ;;  %v325_v39 = vld [vmem:[#allocation5 + $0x1e0] sm:$0xff]  ;;  %v324_v40 = vld [vmem:[#allocation5 + $0x1d8] sm:$0xff]  ;;  %v323_v41 = vld [vmem:[#allocation5 + $0x1d0] sm:$0xff]  ;;  %v254_v10 = vxor.u32 %v253_v9, %v252_v8 }
  0x3e   : > { %364 = vmatprep.subr.mxu0 %v284_v13  ;;  %v322_v42 = vld [vmem:[#allocation5 + $0x1c8] sm:$0xff]  ;;  %v321_v43 = vld [vmem:[#allocation5 + $0x1c0] sm:$0xff]  ;;  %v320_v44 = vld [vmem:[#allocation5 + $0x1b8] sm:$0xff] }
  0x3f   : > { %365 = vmatpush1.msra.mxu0 %v283_v14  ;;  %v319_v45 = vld [vmem:[#allocation5 + $0x1b0] sm:$0xff]  ;;  %v318_v46 = vld [vmem:[#allocation5 + $0x1a8] sm:$0xff]  ;;  %v317_v47 = vld [vmem:[#allocation5 + $0x1a0] sm:$0xff]  ;;  %v255_v11 = vshrl.u32 %v254_v10, 16 }
  0x40   : > { %366 = vmatprep.subr.mxu0 %v282_v15  ;;  %v316_v48 = vld [vmem:[#allocation5 + $0x198] sm:$0xff]  ;;  %v315_v49 = vld [vmem:[#allocation5 + $0x190] sm:$0xff]  ;;  %v314_v50 = vld [vmem:[#allocation5 + $0x188] sm:$0xff] }
  0x41   : > { %367 = vmatpush1.msra.mxu0 %v281_v16  ;;  %v888_v34 = vld.sshfl [vmem:[#allocation2] sm:$0x33 pattern:$0x76325410]  ;;  %v313_v51 = vld [vmem:[#allocation5 + $0x180] sm:$0xff]  ;;  %v311_v53 = vld [vmem:[#allocation5 + $0x170] sm:$0xff]  ;;  %v256_v12 = vxor.u32 %v255_v11, %v254_v10 }
  0x42   : > { %368 = vmatprep.subr.mxu0 %v280_v17  ;;  %v349_v36 = vcombine.high %v888_v34, %v888_v34  ;;  %v312_v52 = vld [vmem:[#allocation5 + $0x178] sm:$0xff]  ;;  %v310_v54 = vld [vmem:[#allocation5 + $0x168] sm:$0xff]  ;;  %v309_v55 = vld [vmem:[#allocation5 + $0x160] sm:$0xff]  ;;  %v333_v17 = vsub.s32 0, %v245_v5 }
  0x43   : > { %369 = vmatpush1.msra.mxu0 %v279_v18  ;;  %v308_v56 = vld [vmem:[#allocation5 + $0x158] sm:$0xff]  ;;  %v307_v57 = vld [vmem:[#allocation5 + $0x150] sm:$0xff]  ;;  %v306_v58 = vld [vmem:[#allocation5 + $0x148] sm:$0xff]  ;;  %v257_v13 = vmul.u32 2146121005, %v256_v12 }
  0x44   : > { %370 = vmatprep.subr.mxu0 %v278_v19  ;;  %416 = vmatprep.mubr.f32.mxu0 %v349_v36  ;;  %v305_v59 = vld [vmem:[#allocation5 + $0x140] sm:$0xff]  ;;  %v304_v60 = vld [vmem:[#allocation5 + $0x138] sm:$0xff]  ;;  %v303_v61 = vld [vmem:[#allocation5 + $0x130] sm:$0xff] }
  0x45   : > { %371 = vmatpush1.msra.mxu0 %v277_v20  ;;  %v302_v62 = vld [vmem:[#allocation5 + $0x128] sm:$0xff]  ;;  %v301_v63 = vld [vmem:[#allocation5 + $0x120] sm:$0xff]  ;;  %v300_v0 = vld [vmem:[#allocation5 + $0x118] sm:$0xff]  ;;  %v258_v14 = vshrl.u32 %v257_v13, 15  ;;  %v337_v20 = vsub.s32 1, %v245_v5 }
  0x46   : > { %372 = vmatprep.subr.mxu0 %v276_v21  ;;  %v299_v1 = vld [vmem:[#allocation5 + $0x110] sm:$0xff]  ;;  %v298_v2 = vld [vmem:[#allocation5 + $0x108] sm:$0xff]  ;;  %v297_v3 = vld [vmem:[#allocation5 + $0x100] sm:$0xff] }
  0x47   : > { %373 = vmatpush1.msra.mxu0 %v275_v22  ;;  %v259_v15 = vxor.u32 %v258_v14, %v257_v13  ;;  %v329_v18 = vld [vmem:[%s952_s4] sm:$0x3] }
  0x48   : > { %374 = vmatprep.subr.mxu0 %v274_v23  ;;  %v334_v21 = vrot.slane %v329_v18, %v333_v17  ;;  %v338_v23 = vrot.slane %v329_v18, %v337_v20 }
  0x49   : > { %375 = vmatpush1.msra.mxu0 %v273_v24  ;;  %v260_v16 = vmul.u32 2221713035, %v259_v15 }
  0x4a   : > { %376 = vmatprep.subr.mxu0 %v272_v26 }
  0x4b   : > { %377 = vmatpush1.msra.mxu0 %v271_v27  ;;  %v261_v19 = vshrl.u32 %v260_v16, 16 }
  0x4c   : > { %378 = vmatprep.subr.mxu0 %v270_v28 }
  0x4d   : > { %379 = vmatpush1.msra.mxu0 %v269_v29  ;;  %v262_v22 = vxor.u32 %v261_v19, %v260_v16  ;;  %v759_v29 = vmov -1e+30  }
  0x4e   : > { %380 = vmatprep.subr.mxu0 %v268_v30  ;;  %v424_v30 = vsel %vm423_vm0, 0.0, %v759_v29 }
  0x4f   : > { %381 = vmatpush1.msra.mxu0 %v267_v31  ;;  %vm263_vm1 = vcmp.ge.u32.totalorder %v262_v22, 429496730 }
  0x50   : > { %382 = vmatprep.subr.mxu0 %v266_v32 }
  0x51   : > { %383 = vmatpush1.msra.mxu0 %v265_v33 }
  0x52   : > { %384 = vmatprep.subr.mxu0 %v328_v35 }
  0x53   : > { %385 = vmatpush2.msra.mxu0 %v327_v37 }
  0x54   : > { %386 = vmatprep.subr.mxu0 %v326_v38 }
  0x55   : > { %387 = vmatpush2.msra.mxu0 %v325_v39 }
  0x56   : > { %388 = vmatprep.subr.mxu0 %v324_v40 }
  0x57   : > { %389 = vmatpush2.msra.mxu0 %v323_v41 }
  0x58   : > { %390 = vmatprep.subr.mxu0 %v322_v42 }
  0x59   : > { %391 = vmatpush2.msra.mxu0 %v321_v43 }
  0x5a   : > { %392 = vmatprep.subr.mxu0 %v320_v44 }
  0x5b   : > { %393 = vmatpush2.msra.mxu0 %v319_v45 }
  0x5c   : > { %394 = vmatprep.subr.mxu0 %v318_v46 }
  0x5d   : > { %395 = vmatpush2.msra.mxu0 %v317_v47 }
  0x5e   : > { %396 = vmatprep.subr.mxu0 %v316_v48 }
  0x5f   : > { %397 = vmatpush2.msra.mxu0 %v315_v49 }
  0x60   : > { %398 = vmatprep.subr.mxu0 %v314_v50 }
  0x61   : > { %399 = vmatpush2.msra.mxu0 %v313_v51 }
  0x62   : > { %400 = vmatprep.subr.mxu0 %v312_v52 }
  0x63   : > { %401 = vmatpush2.msra.mxu0 %v311_v53 }
  0x64   : > { %402 = vmatprep.subr.mxu0 %v310_v54 }
  0x65   : > { %403 = vmatpush2.msra.mxu0 %v309_v55 }
  0x66   : > { %404 = vmatprep.subr.mxu0 %v308_v56 }
  0x67   : > { %405 = vmatpush2.msra.mxu0 %v307_v57 }
  0x68   : > { %406 = vmatprep.subr.mxu0 %v306_v58 }
  0x69   : > { %407 = vmatpush2.msra.mxu0 %v305_v59 }
  0x6a   : > { %408 = vmatprep.subr.mxu0 %v304_v60 }
  0x6b   : > { %409 = vmatpush2.msra.mxu0 %v303_v61 }
  0x6c   : > { %410 = vmatprep.subr.mxu0 %v302_v62 }
  0x6d   : > { %411 = vmatpush2.msra.mxu0 %v301_v63 }
  0x6e   : > { %412 = vmatprep.subr.mxu0 %v300_v0 }
  0x6f   : > { %413 = vmatpush2.msra.mxu0 %v299_v1 }
  0x70   : > { %414 = vmatprep.subr.mxu0 %v298_v2 }
  0x71   : > { %415 = vmatpush2.msra.mxu0 %v297_v3 }
  0x72   : > { %417 = vmatmul.mubr.f32.vlgmr.msra.gmra.mxu0 %v888_v34 }
 0x132   : > { %v418_v24 = vpop.f32.mrf.mxu0 }
 0x133   : > { %v419_v25 = vadd.f32 %v418_v24, %v334_v21 }
 0x134   : > { %v420_v26 = vpop.f32.mrf.mxu0 }
 0x135   : > { %v425_v27 = vmul.f32 1.1111112, %v419_v25  ;;  %v421_v28 = vadd.f32 %v420_v26, %v338_v23 }
 0x137   : > { %442 = vst [vmem:[#allocation2 + $0x2] sm:$0x3] %v421_v28  ;;  %v426_v31 = vsel %vm263_vm1, %v425_v27, 0.0 }
 0x138   : > { %v427_v32 = vadd.f32 %v426_v31, %v424_v30 }
 0x13a   : > { %v429_v33 = vsel %vm428_vm2, %v427_v32, -inf }
 0x13b   : > { %430 = vmax.xlane.f32.xlu0 %v429_v33 }
 0x1c4   : > { %v431_v34 = vpop.xlane.xlu0 %430 }
 0x1c5   : > { %v432_v35 = vsub.f32 %v427_v32, %v431_v34 }
 0x1c7   : > { %v433_v36 = vmul.f32 1.442695, %v432_v35 }
 0x1c9   : > { %632 = vpow2.f32 %v433_v36 }
 0x1d6   : > { %v633_v37 = vpop.eup %632 }
 0x1d7   : > { %v435_v38 = vsel %vm428_vm2, %v633_v37, 0.0 }
 0x1d8   : > { %436 = vadd.xlane.f32.xlu0 %v435_v38 }
 0x261   : > { %v437_v39 = vpop.xlane.xlu0 %436 }
 0x262   : > { %634 = vlog2.f32 %v437_v39 }
 0x26f   : > { %v635_v40 = vpop.eup %634 }
 0x270   : > { %v439_v41 = vmul.f32 0.6931472, %v635_v40  ;;  %446 = sbr.rel (%p565_p8) target bundleno = 630 (0x276), region = 48 }
 0x272   : > { %v440_v42 = vsub.f32 %v432_v35, %v439_v41 }
 0x274   : > { %441 = vst [vmem:[%s229_s30] sm:$0x3] %v440_v42 }
 0x275   : > { %447 = vst [vmem:[#allocation9] sm:$0x3] %v421_v28 }
 0x276 PF: > { %s567_s17 = sshll.u32 %s821_s0, 5  ;;  %s462_s27 = sshll.u32 %s229_s30, 4  ;;  %s463_s27 = int_to_ptr.vmem [resolvable:$true] %s462_s27 }
 0x277   : > { %s460_s22 = scalar_lea.hbm %s953_s5, %s567_s17  ;;  %s449_s29 = scalar_lea.sflag [#allocation7], %s227_s18 }
 0x278   : > { %s662_s10 = scalar_lea.vmem %s463_s27, 32  ;;  %s760_s11 = smov [#allocation8]  }
 0x279   : > { %p663_p9 = scmp.ne.s32.totalorder %s463_s27, %s662_s10  ;;  %s666_s12 = sshll.u32 %s760_s11, 4  ;;  %s667_s12 = int_to_ptr.vmem [resolvable:$false] %s666_s12 }
 0x27a   : > { %s668_s13 = scalar_lea.vmem %s667_s12, 64  ;;  %p669_p12 = scmp.lt.s32.totalorder %s463_s27, %s667_s12 }
 0x27b   : > { %p664_p10 = pnand %p663_p9, %p840_p5  ;;  %p670_p13 = scmp.lt.s32.totalorder %s668_s13, %s662_s10 }
 0x27d   : > { %p665_p11 = pneg %p664_p10  ;;  %p671_p0 = por %p670_p13, %p669_p12 }
 0x27f   : > { %p672_p1 = pnand %p671_p0, %p665_p11 }
 0x281   : > { %675 = shalt.err (!%p672_p1)
}
 0x282   : > { %s676_s14 = scalar_lea.hbm %s460_s22, 32  ;;  %s680_s30 = scalar_lea.hbm %s953_s5, 256 }
 0x283   : > { %p677_p3 = scmp.ne.s32.totalorder %s460_s22, %s676_s14  ;;  %p681_p2 = scmp.lt.s32.totalorder %s460_s22, %s953_s5 }
 0x284   : > { %p682_p6 = scmp.lt.s32.totalorder %s680_s30, %s676_s14 }
 0x285   : > { %p678_p4 = pnand %p677_p3, %p840_p5 }
 0x286   : > { %p683_p8 = por %p682_p6, %p681_p2 }
 0x287   : > { %p679_p7 = pneg %p678_p4 }
 0x289   : > { %p684_p9 = pnand %p683_p8, %p679_p7 }
 0x28b   : > { %687 = shalt.err (!%p684_p9)
}
 0x28c   : > { %576 = dma.vmem_to_hbm [thread:$0]  (%p840_p5), %s463_s27, 32, %s460_s22, %s449_s29  }
 0x28d   : > { %s761_s17 = smov [#allocation9]   ;;  %p960_p11 = scmp.eq.s32.totalorder %s821_s0, 7 }
 0x28e   : > { %s473_s20 = sshll.u32 %s761_s17, 4  ;;  %s474_s20 = int_to_ptr.vmem [resolvable:$true] %s473_s20 }
 0x28f   : > { %s688_s21 = scalar_lea.vmem %s474_s20, 32  ;;  %p695_p0 = scmp.lt.s32.totalorder %s474_s20, %s474_s20 }
 0x290   : > { %p689_p10 = scmp.ne.s32.totalorder %s474_s20, %s688_s21  ;;  %p696_p1 = scmp.lt.s32.totalorder %s688_s21, %s688_s21 }
 0x292   : > { %p690_p12 = pnand %p689_p10, %p960_p11  ;;  %p697_p3 = por %p696_p1, %p695_p0 }
 0x294   : > { %p691_p13 = pneg %p690_p12 }
 0x296   : > { %p698_p4 = pnand %p697_p3, %p691_p13 }
 0x298   : > { %701 = shalt.err (!%p698_p4)
}
 0x299   : > { %p961_p7 = pmov %p960_p11 }
 0x29b   : > { %578 = dma.vmem_to_hbm [thread:$0]  (%p961_p7), %s474_s20, 32, %s954_s6, [#allocation10]  }
 0x29c   : > { %p962_p5 = pmov %p961_p7 }
 0x29e   : > { %733 = dma.done.wait (%p962_p5), [#allocation10], 32   ;;  %p963_p2 = pmov %p962_p5 }
 0x2a0   : > { %735 = vsyncadd (%p963_p2), [#allocation10], 4294967264 }
 0x2a1 PF: > { %p594_p6 = scmp.ge.s32.totalorder %s754_s26, 2  ;;  %s489_s8 = sand.u32 1, %s742_s23  }
 0x2a2   : > { %p964_p8 = scmp.ne.s32.totalorder %s957_s9, 0  ;;  %s490_s22 = scalar_lea.sflag [#allocation7], %s489_s8 }
 0x2a4   : > { %p587_p9 = pnand %p594_p6, %p964_p8 }
 0x2a6   : > { %p588_p10 = pneg %p587_p9 }
 0x2a8   : > { %737 = dma.done.wait (%p588_p10), %s490_s22, 32  }
 0x2a9   : > { %739 = vsyncadd (%p588_p10), %s490_s22, 4294967264  ;;  %p20_p11 = scmp.ge.s32.totalorder %s825_s28, 10   ;;  %s965_s23 = smov %s746_s24 }
 0x2aa   : > { %s966_s24 = smov %s750_s25  ;;  %s967_s25 = smov %s836_s7 }
 0x2ab   : > { %s968_s26 = smov %s825_s28  ;;  %22 = sbr.rel (!%p20_p11) target bundleno = 7 (0x7), region = 92 }
 0x2b0   :  { %495 = vsyncpa [#allocation6], 1 }
 0x2b1   :  { %497 = vsyncpa [#allocation6 + $0x1], 1 }
 0x2b2   :  { %498 = vsyncpa [#allocation7], 1 }
 0x2b3   :  { %500 = vsyncpa [#allocation7 + $0x1], 1 }
 0x2b4   :  { %501 = vsyncpa [#allocation10], 1 }

</bundles_post_ra>
